<compile_context>
chip_gen: v7x
topology: tpu7x:2x2x1
jax: 0.10.0
libtpu: 0.0.40
codegen_flags: <defaults>
</compile_context>

<pallas_src>
import jax
import jax.numpy as jnp
from jax import lax
from jax.experimental import pallas as pl
from jax.experimental.pallas import tpu as pltpu

LANE = 128
# Combined HBM->VMEM bytes (both inputs together) per grid step.
TARGET_STEP_BYTES = 8 * 1024 * 1024
# In-kernel accumulation chunk (rows): 512 x 128 f32 temps = 256 KiB each.
MAX_CHUNK_ROWS = 512
# Logit sentinel for padded/masked elements: exp(-1e4) underflows to 0 in f32,
# so BCE term, sigmoid and (zero) target all contribute exactly 0.
NEG_SENTINEL = -1.0e4
# Stream these dtypes through the kernel natively; upcast everything else.
_NATIVE_STREAM_DTYPES = (jnp.float32, jnp.bfloat16, jnp.float16)


def _round_up(a, b):
    return (a + b - 1) // b * b


def _pick_chunk_rows(block_rows):
    """Largest multiple-of-8 chunk <= MAX_CHUNK_ROWS that divides block_rows."""
    if block_rows <= MAX_CHUNK_ROWS:
        return block_rows
    for d in range(MAX_CHUNK_ROWS, 7, -8):
        if block_rows % d == 0:
            return d
    return 8  # unreachable: block_rows is always a multiple of 8


def _make_partial_kernel(block_rows, chunk_rows, n_blocks, last_valid_rows,
                         approx_reciprocal):
    """Kernel producing per-block partial sums [bce, sig*t, sig+t], each (8,128)."""
    n_chunks = block_rows // chunk_rows
    # A mask is only needed if the LAST block extends past the array rows.
    needs_mask = last_valid_rows < block_rows

    def kernel(x_ref, t_ref, out_ref):
        if needs_mask:
            is_last = pl.program_id(0) == (n_blocks - 1)
            valid_rows = jnp.where(is_last, last_valid_rows,
                                   block_rows).astype(jnp.int32)
            row_iota = lax.broadcasted_iota(jnp.int32, (chunk_rows, LANE), 0)

        def chunk_body(c, carry):
            acc_bce, acc_inter, acc_denom = carry
            r0 = c * chunk_rows
            if not isinstance(r0, int):
                r0 = pl.multiple_of(r0, 8)
            x = x_ref[pl.ds(r0, chunk_rows), :].astype(jnp.float32)
            t = t_ref[pl.ds(r0, chunk_rows), :].astype(jnp.float32)
            if needs_mask:
                # Rows past the array end hold stale VMEM; masking the INPUTS
                # (not the outputs) also neutralizes NaN/Inf garbage.  For all
                # full blocks the compare is trivially true.
                valid = row_iota < (valid_rows - r0)
                x = jnp.where(valid, x, NEG_SENTINEL)
                t = jnp.where(valid, t, 0.0)

            # One shared transcendental e = exp(-|x|) feeds BCE and sigmoid.
            e = jnp.exp(-jnp.abs(x))
            # Stable BCE-with-logits: max(x,0) - x*t + log1p(exp(-|x|))
            bce = jnp.maximum(x, 0.0) - x * t + jnp.log1p(e)
            if approx_reciprocal:
                inv = pl.reciprocal(1.0 + e, approx=True)   # EUP slot, ~free
            else:
                inv = 1.0 / (1.0 + e)
            sig = jnp.where(x >= 0.0, inv, e * inv)

            def fold(v):
                # Reduce only over whole (8,128) row-groups: pure VPU adds,
                # no cross-lane (XLU) work anywhere in the kernel.
                if chunk_rows == 8:
                    return v
                return jnp.sum(v.reshape(chunk_rows // 8, 8, LANE), axis=0)

            return (acc_bce + fold(bce),
                    acc_inter + fold(sig * t),
                    acc_denom + fold(sig + t))

        zeros = jnp.zeros((8, LANE), jnp.float32)
        init = (zeros, zeros, zeros)
        if n_chunks <= 8:
            # Short trip counts: fully unroll at trace time (LLO visibility).
            acc = init
            for c in range(n_chunks):
                acc = chunk_body(c, acc)
            acc_bce, acc_inter, acc_denom = acc
        else:
            # Long trip counts: loop keeps code size bounded; each chunk body
            # is >= 64 vregs of work so per-iteration overhead is negligible.
            acc_bce, acc_inter, acc_denom = lax.fori_loop(
                0, n_chunks, chunk_body, init)

        out_ref[0, 0, :, :] = acc_bce
        out_ref[0, 1, :, :] = acc_inter
        out_ref[0, 2, :, :] = acc_denom

    return kernel


def _partial_sums(x, t, approx_reciprocal):
    """(3, 8, 128) partial sums of [bce, sig*t, sig+t] over flat logits/targets."""
    n = x.shape[0]
    rows = pl.cdiv(n, LANE)
    bytes_per_row = LANE * (x.dtype.itemsize + t.dtype.itemsize)
    cap_rows = max(
        MAX_CHUNK_ROWS,
        TARGET_STEP_BYTES // bytes_per_row // MAX_CHUNK_ROWS * MAX_CHUNK_ROWS)

    if rows >= cap_rows:
        # Large input: stream as-is in cap-sized blocks via one pallas_call;
        # the ragged last block (if any) is masked in-kernel, so there is no
        # full-array pad/slice copy.  Only the (<128 element) lane remainder is
        # ever padded (unavoidable for the (rows, 128) lane-major view).
        block_rows = cap_rows
        pad_rows = rows
    elif rows > MAX_CHUNK_ROWS:
        # Mid-size input: single block padded to a chunk multiple -> no mask.
        block_rows = _round_up(rows, MAX_CHUNK_ROWS)
        pad_rows = block_rows
    else:
        # Small input: one (8,128)-aligned block.
        block_rows = _round_up(rows, 8)
        pad_rows = block_rows

    n_pad = pad_rows * LANE
    if n_pad != n:
        # Sentinel padding contributes exactly zero to every partial sum.
        x = jnp.pad(x, (0, n_pad - n), constant_values=NEG_SENTINEL)
        t = jnp.pad(t, (0, n_pad - n), constant_values=0)
    x2 = x.reshape(pad_rows, LANE)
    t2 = t.reshape(pad_rows, LANE)

    n_blocks = pl.cdiv(pad_rows, block_rows)
    last_valid_rows = pad_rows - (n_blocks - 1) * block_rows
    chunk_rows = _pick_chunk_rows(block_rows)
    kernel = _make_partial_kernel(block_rows, chunk_rows, n_blocks,
                                  last_valid_rows, approx_reciprocal)

    partials = pl.pallas_call(
        kernel,
        out_shape=jax.ShapeDtypeStruct((n_blocks, 3, 8, LANE), jnp.float32),
        grid_spec=pltpu.PrefetchScalarGridSpec(
            num_scalar_prefetch=0,
            grid=(n_blocks,),
            in_specs=[
                # If xprof shows exposed DMA on v7x, add
                # pipeline_mode=pl.Buffered(3) here (VMEM budget tolerates it).
                pl.BlockSpec((block_rows, LANE), lambda i: (i, 0)),
                pl.BlockSpec((block_rows, LANE), lambda i: (i, 0)),
            ],
            out_specs=pl.BlockSpec((1, 3, 8, LANE), lambda i: (i, 0, 0, 0)),
        ),
        compiler_params=pltpu.CompilerParams(
            # Per-block partials are independent -> megacore-shardable grid.
            dimension_semantics=("parallel",),
            # 2 inputs x 2 buffers x <=4 MiB + chunked temps << 32 MiB, which is
            # safe on every generation (v5e scoped default is only 16 MiB).
            vmem_limit_bytes=32 * 1024 * 1024,
        ),
    )(x2, t2)
    return jnp.sum(partials, axis=0)


def dice_bce_loss(inputs, targets, smooth=1.0, approx_reciprocal=True):
    """Pallas implementation of DiceBCELoss.forward (returns a scalar)."""
    x = inputs if inputs.dtype in _NATIVE_STREAM_DTYPES else inputs.astype(jnp.float32)
    t = targets if targets.dtype in _NATIVE_STREAM_DTYPES else targets.astype(jnp.float32)
    x = x.reshape(-1)
    t = t.reshape(-1)
    if x.shape != t.shape:
        raise ValueError(f"inputs/targets numel mismatch: {x.shape} vs {t.shape}")
    n = x.shape[0]
    if n == 0:
        # Mean BCE of an empty tensor is NaN (matches torch); dice term is 0.
        return jnp.float32(jnp.nan)

    sums = _partial_sums(x, t, approx_reciprocal)        # (3, 8, 128)
    totals = jnp.sum(sums, axis=(1, 2))                  # tiny final combine in JAX
    bce_mean = totals[0] / jnp.float32(n)
    dice_loss = 1.0 - (2.0 * totals[1] + smooth) / (totals[2] + smooth)
    return bce_mean + dice_loss


def dice_bce_loss_ref(inputs, targets, smooth=1.0):
    """Pure-JAX reference mirroring the PyTorch forward."""
    x = inputs.reshape(-1).astype(jnp.float32)
    t = targets.reshape(-1).astype(jnp.float32)
    bce = jnp.mean(jnp.maximum(x, 0.0) - x * t + jnp.log1p(jnp.exp(-jnp.abs(x))))
    s = jax.nn.sigmoid(x)
    inter = jnp.sum(s * t)
    dice = 1.0 - (2.0 * inter + smooth) / (jnp.sum(s) + jnp.sum(t) + smooth)
    return bce + dice


if __name__ == "__main__":
    key = jax.random.PRNGKey(0)
    k1, k2 = jax.random.split(key)
    # NCHW-shaped logits and binary targets, small synthetic shapes.
    logits = jax.random.normal(k1, (2, 4, 16, 16), dtype=jnp.float32)
    targets = (jax.random.uniform(k2, (2, 4, 16, 16)) > 0.5).astype(jnp.float32)

    loss = jax.jit(lambda a, b: dice_bce_loss(a, b, smooth=1.0))(logits, targets)
    loss = jax.block_until_ready(loss)

    ref = dice_bce_loss_ref(logits, targets, smooth=1.0)
    # Tolerance accounts for the approx EUP reciprocal (~1e-3-level) used for
    # the sigmoid; the BCE path is exact.
    assert jnp.allclose(loss, ref, rtol=1e-2, atol=1e-2), (loss, ref)
    print("KERNEL_OK")
</pallas_src>

<mosaic_0001>
module attributes {stable_mosaic.version = 11 : i64} {
  func.func @kernel(%arg0: i32, %arg1: memref<16x128xf32, #tpu.memory_space<vmem>>, %arg2: memref<16x128xf32, #tpu.memory_space<vmem>>, %arg3: memref<1x3x8x128xf32, #tpu.memory_space<vmem>>) attributes {dimension_semantics = [#tpu.dimension_semantics<parallel>], iteration_bounds = array<i64: 1>, scalar_prefetch = 0 : i64, scratch_operands = 0 : i64, tpu.core_type = #tpu.core_type<tc>, window_params = [{transform_indices = @transform_0, window_bounds = array<i64: 16, 128>}, {transform_indices = @transform_1, window_bounds = array<i64: 16, 128>}, {transform_indices = @transform_2, window_bounds = array<i64: 1, 3, 8, 128>}]} {
    %cst = arith.constant 0.000000e+00 : f32
    %0 = vector.broadcast %cst : f32 to vector<8x128xf32>
    %c0 = arith.constant 0 : index
    %c0_0 = arith.constant 0 : index
    %1 = vector.load %arg1[%c0, %c0_0] : memref<16x128xf32, #tpu.memory_space<vmem>>, vector<16x128xf32>
    %c0_1 = arith.constant 0 : index
    %c0_2 = arith.constant 0 : index
    %2 = vector.load %arg2[%c0_1, %c0_2] : memref<16x128xf32, #tpu.memory_space<vmem>>, vector<16x128xf32>
    %3 = math.absf %1 : vector<16x128xf32>
    %cst_3 = arith.constant 0.000000e+00 : f32
    %4 = vector.broadcast %cst_3 : f32 to vector<16x128xf32>
    %5 = arith.subf %4, %3 : vector<16x128xf32>
    %6 = math.exp %5 : vector<16x128xf32>
    %cst_4 = arith.constant 0.000000e+00 : f32
    %7 = vector.broadcast %cst_4 : f32 to vector<16x128xf32>
    %8 = arith.maximumf %1, %7 : vector<16x128xf32>
    %9 = arith.mulf %1, %2 : vector<16x128xf32>
    %10 = arith.subf %8, %9 : vector<16x128xf32>
    %11 = math.log1p %6 : vector<16x128xf32>
    %12 = arith.addf %10, %11 : vector<16x128xf32>
    %cst_5 = arith.constant 1.000000e+00 : f32
    %13 = vector.broadcast %cst_5 : f32 to vector<16x128xf32>
    %14 = arith.addf %13, %6 : vector<16x128xf32>
    %15 = tpu.reciprocal %14 {approx = true} : vector<16x128xf32> -> vector<16x128xf32>
    %cst_6 = arith.constant 0.000000e+00 : f32
    %16 = vector.broadcast %cst_6 : f32 to vector<16x128xf32>
    %17 = arith.cmpf oge, %1, %16 : vector<16x128xf32>
    %18 = arith.mulf %6, %15 : vector<16x128xf32>
    %19 = arith.select %17, %15, %18 : vector<16x128xi1>, vector<16x128xf32>
    %20 = vector.shape_cast %12 : vector<16x128xf32> to vector<2x8x128xf32>
    %cst_7 = arith.constant dense<0.000000e+00> : vector<8x128xf32>
    %21 = vector.multi_reduction <add>, %20, %cst_7 [0] : vector<2x8x128xf32> to vector<8x128xf32>
    %22 = arith.addf %0, %21 : vector<8x128xf32>
    %23 = arith.mulf %19, %2 : vector<16x128xf32>
    %24 = vector.shape_cast %23 : vector<16x128xf32> to vector<2x8x128xf32>
    %cst_8 = arith.constant dense<0.000000e+00> : vector<8x128xf32>
    %25 = vector.multi_reduction <add>, %24, %cst_8 [0] : vector<2x8x128xf32> to vector<8x128xf32>
    %26 = arith.addf %0, %25 : vector<8x128xf32>
    %27 = arith.addf %19, %2 : vector<16x128xf32>
    %28 = vector.shape_cast %27 : vector<16x128xf32> to vector<2x8x128xf32>
    %cst_9 = arith.constant dense<0.000000e+00> : vector<8x128xf32>
    %29 = vector.multi_reduction <add>, %28, %cst_9 [0] : vector<2x8x128xf32> to vector<8x128xf32>
    %30 = arith.addf %0, %29 : vector<8x128xf32>
    %c0_10 = arith.constant 0 : index
    %c0_11 = arith.constant 0 : index
    %c0_12 = arith.constant 0 : index
    %c0_13 = arith.constant 0 : index
    %31 = vector.load %arg3[%c0_10, %c0_11, %c0_12, %c0_13] : memref<1x3x8x128xf32, #tpu.memory_space<vmem>>, vector<1x1x8x128xf32>
    %32 = vector.shape_cast %31 : vector<1x1x8x128xf32> to vector<8x128xf32>
    %33 = vector.shape_cast %22 : vector<8x128xf32> to vector<1x1x8x128xf32>
    tpu.vector_store %arg3[%c0_10, %c0_11, %c0_12, %c0_13], %33 {strides = array<i32>} : memref<1x3x8x128xf32, #tpu.memory_space<vmem>>, vector<1x1x8x128xf32>,
    %c0_14 = arith.constant 0 : index
    %c1 = arith.constant 1 : index
    %c0_15 = arith.constant 0 : index
    %c0_16 = arith.constant 0 : index
    %34 = vector.load %arg3[%c0_14, %c1, %c0_15, %c0_16] : memref<1x3x8x128xf32, #tpu.memory_space<vmem>>, vector<1x1x8x128xf32>
    %35 = vector.shape_cast %34 : vector<1x1x8x128xf32> to vector<8x128xf32>
    %36 = vector.shape_cast %26 : vector<8x128xf32> to vector<1x1x8x128xf32>
    tpu.vector_store %arg3[%c0_14, %c1, %c0_15, %c0_16], %36 {strides = array<i32>} : memref<1x3x8x128xf32, #tpu.memory_space<vmem>>, vector<1x1x8x128xf32>,
    %c0_17 = arith.constant 0 : index
    %c2 = arith.constant 2 : index
    %c0_18 = arith.constant 0 : index
    %c0_19 = arith.constant 0 : index
    %37 = vector.load %arg3[%c0_17, %c2, %c0_18, %c0_19] : memref<1x3x8x128xf32, #tpu.memory_space<vmem>>, vector<1x1x8x128xf32>
    %38 = vector.shape_cast %37 : vector<1x1x8x128xf32> to vector<8x128xf32>
    %39 = vector.shape_cast %30 : vector<8x128xf32> to vector<1x1x8x128xf32>
    tpu.vector_store %arg3[%c0_17, %c2, %c0_18, %c0_19], %39 {strides = array<i32>} : memref<1x3x8x128xf32, #tpu.memory_space<vmem>>, vector<1x1x8x128xf32>,
    return
  }
  func.func @transform_0(%arg0: i32) -> (i32, i32) {
    %c0_i32 = arith.constant 0 : i32
    %c0_i32_0 = arith.constant 0 : i32
    return %arg0, %c0_i32 : i32, i32
  }
  func.func @transform_1(%arg0: i32) -> (i32, i32) {
    %c0_i32 = arith.constant 0 : i32
    %c0_i32_0 = arith.constant 0 : i32
    return %arg0, %c0_i32 : i32, i32
  }
  func.func @transform_2(%arg0: i32) -> (i32, i32, i32, i32) {
    %c0_i32 = arith.constant 0 : i32
    %c0_i32_0 = arith.constant 0 : i32
    %c0_i32_1 = arith.constant 0 : i32
    %c0_i32_2 = arith.constant 0 : i32
    return %arg0, %c0_i32, %c0_i32_0, %c0_i32_1 : i32, i32, i32, i32
  }
}

</mosaic_0001>

<bundles_post_ra>
// kernel: _lambda_.1
= control target key start
LH: loop header
LB: loop body
LE: loop exit
PB: predicated region body
PF: predicated region fallthrough
CT: control target
= control target key end

     0   :  { %s128_s0 = inlined_call_operand.vmem [shape: f32[16,128], index: 0, kind: input, shape index: {}]   ;;  %s129_s1 = inlined_call_operand.vmem [shape: f32[16,128], index: 1, kind: input, shape index: {}]   ;;  %s130_s2 = inlined_call_operand.vmem [shape: f32[1,3,8,128], index: 2, kind: output, shape index: {}]  }
   0x1   :  { %v11_v0 = vld [vmem:[%s128_s0] sm:$0xff]  ;;  %v12_v1 = vld [vmem:[%s128_s0 + $0x8] sm:$0xff] }
   0x2   :  { %v15_v2 = vand.u32 2147483647, %v11_v0  ;;  %v16_v3 = vand.u32 2147483647, %v12_v1  ;;  %v13_v14 = vld [vmem:[%s129_s1] sm:$0xff]  ;;  %v14_v15 = vld [vmem:[%s129_s1 + $0x8] sm:$0xff] }
   0x3   :  { %v23_v17 = vmax.f32 %v11_v0, 0.0  ;;  %v25_v18 = vmul.f32 %v13_v14, %v11_v0  ;;  %v24_v21 = vmax.f32 %v12_v1, 0.0  ;;  %v26_v22 = vmul.f32 %v14_v15, %v12_v1 }
   0x4   :  { %v17_v4 = vsub.f32 0.0, %v15_v2  ;;  %v18_v5 = vsub.f32 0.0, %v16_v3  ;;  %vm53_vm2 = vcmp.ge.f32.partialorder %v11_v0, 0.0  ;;  %vm54_vm3 = vcmp.ge.f32.partialorder %v12_v1, 0.0 }
   0x5   :  { %v27_v26 = vsub.f32 %v23_v17, %v25_v18  ;;  %v28_v29 = vsub.f32 %v24_v21, %v26_v22 }
   0x6   :  { %v19_v6 = vmul.f32 1.442695, %v17_v4  ;;  %v21_v7 = vmul.f32 1.442695, %v18_v5 }
   0x8   :  { %80 = vpow2.f32 %v19_v6 }
   0x9   :  { %82 = vpow2.f32 %v21_v7 }
  0x12   :  { %v81_v8 = vpop.eup %80 }
  0x13   :  { %v83_v9 = vpop.eup %82  ;;  %v29_v10 = vadd.f32 1.0, %v81_v8  ;;  %v32_v12 = vmul.f32 -0.5, %v81_v8  ;;  %v35_v19 = vand.u32 2147483647, %v81_v8 }
  0x14   :  { %v38_v11 = vadd.f32 1.0, %v83_v9  ;;  %v41_v13 = vmul.f32 -0.5, %v83_v9  ;;  %v44_v23 = vand.u32 2147483647, %v83_v9 }
  0x15   :  { %84 = vlog2.f32 %v29_v10  ;;  %v33_v16 = vadd.f32 1.0, %v32_v12  ;;  %vm36_vm0 = vcmp.lt.f32.partialorder %v35_v19, 0.0004427343 }
  0x16   :  { %86 = vlog2.f32 %v38_v11  ;;  %v42_v20 = vadd.f32 1.0, %v41_v13  ;;  %vm45_vm1 = vcmp.lt.f32.partialorder %v44_v23, 0.0004427343 }
  0x17   :  { %88 = vrcp.f32 %v29_v10  ;;  %v34_v24 = vmul.f32 %v81_v8, %v33_v16 }
  0x18   :  { %90 = vrcp.f32 %v38_v11  ;;  %v43_v27 = vmul.f32 %v83_v9, %v42_v20 }
  0x1f   :  { %v85_v25 = vpop.eup %84 }
  0x20   :  { %v87_v28 = vpop.eup %86  ;;  %v31_v30 = vmul.f32 0.6931472, %v85_v25 }
  0x21   :  { %v89_v31 = vpop.eup %88  ;;  %v40_v32 = vmul.f32 0.6931472, %v87_v28 }
  0x22   :  { %v91_v33 = vpop.eup %90  ;;  %v37_v34 = vsel %vm36_vm0, %v34_v24, %v31_v30  ;;  %v55_v35 = vmul.f32 %v89_v31, %v81_v8 }
  0x23   :  { %v46_v36 = vsel %vm45_vm1, %v43_v27, %v40_v32  ;;  %v47_v37 = vadd.f32 %v37_v34, %v27_v26  ;;  %v56_v38 = vmul.f32 %v91_v33, %v83_v9 }
  0x24   :  { %v48_v39 = vadd.f32 %v46_v36, %v28_v29  ;;  %v57_v40 = vsel %vm53_vm2, %v89_v31, %v55_v35 }
  0x25   :  { %v58_v41 = vsel %vm54_vm3, %v91_v33, %v56_v38  ;;  %v61_v42 = vmul.f32 %v57_v40, %v13_v14  ;;  %v65_v43 = vadd.f32 %v57_v40, %v13_v14 }
  0x26   :  { %v59_v44 = vadd.f32 %v48_v39, %v47_v37  ;;  %v62_v45 = vmul.f32 %v58_v41, %v14_v15  ;;  %v66_v46 = vadd.f32 %v58_v41, %v14_v15 }
  0x28   :  { %69 = vst [vmem:[%s130_s2] sm:$0xff] %v59_v44  ;;  %v63_v47 = vadd.f32 %v62_v45, %v61_v42  ;;  %v67_v48 = vadd.f32 %v66_v46, %v65_v43 }
  0x2a   :  { %78 = vst [vmem:[%s130_s2 + $0x8] sm:$0xff] %v63_v47  ;;  %79 = vst [vmem:[%s130_s2 + $0x10] sm:$0xff] %v67_v48 }

</bundles_post_ra>
